<compile_context>
chip_gen: v6e
topology: v6e:2x2x1
jax: 0.10.0
libtpu: 0.0.40
codegen_flags: <defaults>
</compile_context>

<pallas_src>
import jax
import jax.numpy as jnp
from jax.experimental import pallas as pl
from jax.experimental.pallas import tpu as pltpu

_LANE = 128
_SUBLANE = 8


def _round_up(x, m):
    return ((x + m - 1) // m) * m


def _cdiv(a, b):
    return (a + b - 1) // b


def _default_tile_b(B):
    # Big batch tiles amortize the ~0.35 us/grid-step overhead and give the
    # MXU a real M dimension; cap at 512 so the double-buffered working set
    # stays at a few MiB (well under v7x's 64 MiB physical / 32 MiB scoped
    # VMEM).  Prefer >= 2 grid steps when B allows so the "parallel" batch
    # axis actually shards across v7x's 2 TensorCores.
    tb = min(512, _round_up(B, _SUBLANE))
    if _cdiv(B, tb) < 2 and B >= 2 * _SUBLANE:
        tb = _round_up(_cdiv(B, 2), _SUBLANE)
    return max(tb, _SUBLANE)


def fusion_kernel(t_ref, v_ref, wt_ref, wvr_ref, wo_ref,
                  bt_ref, bvr_ref, bor_ref, z_ref):
    # t_ref   : [TB, dim_t]         batch tile of text features
    # v_ref   : [TB, dim_v*R]       batch tile of flattened visual features
    # wvr_ref : [dim_v*R, mm_p]     row-repeated Wv (row c*R + r == Wv[c])
    # bvr_ref / bor_ref             already carry the R-fold of bv / bo
    t_proj = jnp.dot(t_ref[...], wt_ref[...],
                     preferred_element_type=jnp.float32) + bt_ref[...]     # [TB, mm_p]
    v_proj = jnp.dot(v_ref[...], wvr_ref[...],
                     preferred_element_type=jnp.float32) + bvr_ref[...]    # [TB, mm_p]
    h_sum = t_proj * v_proj                                                # element-wise gate
    z_ref[...] = jnp.dot(h_sum, wo_ref[...],
                         preferred_element_type=jnp.float32) + bor_ref[...]  # [TB, dz_p]


def fusion_forward(t, v, params, *, tile_b=None):
    """t: [B, dim_t] f32, v: [B, dim_v, W, H] f32 -> z: [B, dim_z] f32."""
    wt, wv, wo, bt, bv, bo = params
    B, dim_v, W, H = v.shape
    R = W * H
    dim_t = t.shape[1]
    mm = wt.shape[1]
    dim_z = wo.shape[1]
    f32 = jnp.float32

    # Lane-dense padding of hidden / output feature dims.  Exact: padded
    # columns of Wt/bt are zero -> padded h_sum columns are zero; padded rows
    # and columns of Wo/bo are zero -> padded z columns are zero (sliced off).
    mm_p = _round_up(mm, _LANE)
    dz_p = _round_up(dim_z, _LANE)

    if tile_b is None:
        tile_b = _default_tile_b(B)
    tile_b = max(_SUBLANE, _round_up(tile_b, _SUBLANE))

    # ---- weight / bias padding (cheap, built once; R-scale folded in) ------
    wt_p = jnp.zeros((dim_t, mm_p), f32).at[:, :mm].set(wt.astype(f32))
    wv_p = jnp.zeros((dim_v, mm_p), f32).at[:, :mm].set(wv.astype(f32))
    # Row-repeated Wv matching the flattened [dim_v*R] layout of v:
    # flattened element index c*R + r pairs with Wv row c.
    wv_rep = jnp.repeat(wv_p, R, axis=0)                                   # [dim_v*R, mm_p]
    wo_p = jnp.zeros((mm_p, dz_p), f32).at[:mm, :dim_z].set(wo.astype(f32))
    bt_p = jnp.zeros((1, mm_p), f32).at[:, :mm].set(bt.astype(f32).reshape(1, -1))
    bvr_p = jnp.zeros((1, mm_p), f32).at[:, :mm].set(
        jnp.float32(R) * bv.astype(f32).reshape(1, -1))
    bor_p = jnp.zeros((1, dz_p), f32).at[:, :dim_z].set(
        jnp.float32(R) * bo.astype(f32).reshape(1, -1))

    # ---- inputs: free flatten only (no padding copy, no transpose) ---------
    v_flat = v.reshape(B, dim_v * R).astype(f32)
    t_f = t.astype(f32)

    grid = (_cdiv(B, tile_b),)

    in_specs = [
        pl.BlockSpec((tile_b, dim_t), lambda b: (b, 0)),        # t tile
        pl.BlockSpec((tile_b, dim_v * R), lambda b: (b, 0)),    # v tile (flat)
        pl.BlockSpec((dim_t, mm_p), lambda b: (0, 0)),          # Wt
        pl.BlockSpec((dim_v * R, mm_p), lambda b: (0, 0)),      # Wv (row-repeated)
        pl.BlockSpec((mm_p, dz_p), lambda b: (0, 0)),           # Wo
        pl.BlockSpec((1, mm_p), lambda b: (0, 0)),              # bt
        pl.BlockSpec((1, mm_p), lambda b: (0, 0)),              # R*bv
        pl.BlockSpec((1, dz_p), lambda b: (0, 0)),              # R*bo
    ]
    out_specs = pl.BlockSpec((tile_b, dz_p), lambda b: (b, 0))

    # VMEM budget: only batch-tiled blocks are double-buffered; constant-index
    # weights counted once; plus slack.  Stays well under the 32 MiB scoped /
    # 64 MiB (v7x) physical ceiling.
    tiled_elems = tile_b * (dim_t + dim_v * R + dz_p)
    const_elems = (dim_t * mm_p + dim_v * R * mm_p + mm_p * dz_p
                   + 2 * mm_p + dz_p)
    vmem_limit = min(4 * (2 * tiled_elems + const_elems) + (4 << 20), 32 << 20)

    z_pad = pl.pallas_call(
        fusion_kernel,
        out_shape=jax.ShapeDtypeStruct((B, dz_p), f32),
        grid_spec=pltpu.PrefetchScalarGridSpec(
            num_scalar_prefetch=0,
            grid=grid,
            in_specs=in_specs,
            out_specs=out_specs,
        ),
        compiler_params=pltpu.CompilerParams(
            dimension_semantics=("parallel",),
            vmem_limit_bytes=vmem_limit,
        ),
    )(t_f, v_flat, wt_p, wv_rep, wo_p, bt_p, bvr_p, bor_p)

    return z_pad[:, :dim_z]


def fusion_reference(t, v, params):
    """Pure-JAX per-region reference matching the PyTorch forward (unfolded)."""
    wt, wv, wo, bt, bv, bo = params
    B, dim_v, W, H = v.shape
    R = W * H
    v_r = jnp.transpose(v.reshape(B, dim_v, R), (0, 2, 1))      # [B, R, dim_v]
    t_e = jnp.broadcast_to(t[:, None, :], (B, R, t.shape[1]))   # [B, R, dim_t]
    h = (t_e @ wt + bt) * (v_r @ wv + bv)                       # [B, R, mm]
    vals = h @ wo + bo                                          # [B, R, dim_z]
    return vals.sum(axis=1)                                     # [B, dim_z]


if __name__ == "__main__":
    # small shapes consistent with the module
    B, dim_v, W, H = 2, 4, 16, 16      # v: [batch, dim_v, w, h]
    dim_t, mm, dim_z = 32, 32, 32

    key = jax.random.PRNGKey(0)
    k_t, k_v, k_wt, k_wv, k_wo, k_bt, k_bv, k_bo = jax.random.split(key, 8)

    t = jax.random.normal(k_t, (B, dim_t), dtype=jnp.float32)
    v = jax.random.normal(k_v, (B, dim_v, W, H), dtype=jnp.float32)

    # deterministic, in-script parameter init (synthetic weights)
    wt = jax.random.normal(k_wt, (dim_t, mm), dtype=jnp.float32) * 0.05
    wv = jax.random.normal(k_wv, (dim_v, mm), dtype=jnp.float32) * 0.05
    wo = jax.random.normal(k_wo, (mm, dim_z), dtype=jnp.float32) * 0.05
    bt = jax.random.normal(k_bt, (1, mm), dtype=jnp.float32) * 0.01
    bv = jax.random.normal(k_bv, (1, mm), dtype=jnp.float32) * 0.01
    bo = jax.random.normal(k_bo, (1, dim_z), dtype=jnp.float32) * 0.01
    params = (wt, wv, wo, bt, bv, bo)

    z = fusion_forward(t, v, params)
    z = jax.block_until_ready(z)

    z_ref = fusion_reference(t, v, params)
    assert z.shape == (B, dim_z)
    assert jnp.allclose(z, z_ref, atol=1e-3, rtol=1e-3), "mismatch vs reference"

    print("KERNEL_OK")
</pallas_src>

<mosaic_0001>
module attributes {stable_mosaic.version = 11 : i64} {
  func.func @fusion_kernel(%arg0: i32, %arg1: memref<8x32xf32, #tpu.memory_space<vmem>>, %arg2: memref<8x1024xf32, #tpu.memory_space<vmem>>, %arg3: memref<32x128xf32, #tpu.memory_space<vmem>>, %arg4: memref<1024x128xf32, #tpu.memory_space<vmem>>, %arg5: memref<128x128xf32, #tpu.memory_space<vmem>>, %arg6: memref<1x128xf32, #tpu.memory_space<vmem>>, %arg7: memref<1x128xf32, #tpu.memory_space<vmem>>, %arg8: memref<1x128xf32, #tpu.memory_space<vmem>>, %arg9: memref<8x128xf32, #tpu.memory_space<vmem>>) attributes {dimension_semantics = [#tpu.dimension_semantics<parallel>], iteration_bounds = array<i64: 1>, scalar_prefetch = 0 : i64, scratch_operands = 0 : i64, tpu.core_type = #tpu.core_type<tc>, window_params = [{transform_indices = @transform_0, window_bounds = array<i64: 8, 32>}, {transform_indices = @transform_1, window_bounds = array<i64: 8, 1024>}, {pipeline_mode = #tpu.pipeline_mode<synchronous>, transform_indices = @transform_2, window_bounds = array<i64: 32, 128>}, {pipeline_mode = #tpu.pipeline_mode<synchronous>, transform_indices = @transform_3, window_bounds = array<i64: 1024, 128>}, {pipeline_mode = #tpu.pipeline_mode<synchronous>, transform_indices = @transform_4, window_bounds = array<i64: 128, 128>}, {pipeline_mode = #tpu.pipeline_mode<synchronous>, transform_indices = @transform_5, window_bounds = array<i64: 1, 128>}, {pipeline_mode = #tpu.pipeline_mode<synchronous>, transform_indices = @transform_6, window_bounds = array<i64: 1, 128>}, {pipeline_mode = #tpu.pipeline_mode<synchronous>, transform_indices = @transform_7, window_bounds = array<i64: 1, 128>}, {transform_indices = @transform_8, window_bounds = array<i64: 8, 128>}]} {
    %c0 = arith.constant 0 : index
    %c0_0 = arith.constant 0 : index
    %0 = vector.load %arg1[%c0, %c0_0] : memref<8x32xf32, #tpu.memory_space<vmem>>, vector<8x32xf32>
    %c0_1 = arith.constant 0 : index
    %c0_2 = arith.constant 0 : index
    %1 = vector.load %arg3[%c0_1, %c0_2] : memref<32x128xf32, #tpu.memory_space<vmem>>, vector<32x128xf32>
    %cst = arith.constant dense<0.000000e+00> : vector<8x128xf32>
    %2 = tpu.matmul %0, %1, %cst {dimension_numbers = #tpu.dot_dimension_numbers<[1], [0], [0], [1], [0, 0, 1, 1], [], []>} : vector<8x32xf32>, vector<32x128xf32>, vector<8x128xf32> -> vector<8x128xf32>
    %c0_3 = arith.constant 0 : index
    %c0_4 = arith.constant 0 : index
    %3 = vector.load %arg6[%c0_3, %c0_4] : memref<1x128xf32, #tpu.memory_space<vmem>>, vector<1x128xf32>
    %4 = vector.broadcast %3 : vector<1x128xf32> to vector<8x128xf32>
    %5 = arith.addf %2, %4 : vector<8x128xf32>
    %c0_5 = arith.constant 0 : index
    %c0_6 = arith.constant 0 : index
    %6 = vector.load %arg2[%c0_5, %c0_6] : memref<8x1024xf32, #tpu.memory_space<vmem>>, vector<8x1024xf32>
    %c0_7 = arith.constant 0 : index
    %c0_8 = arith.constant 0 : index
    %7 = vector.load %arg4[%c0_7, %c0_8] : memref<1024x128xf32, #tpu.memory_space<vmem>>, vector<1024x128xf32>
    %cst_9 = arith.constant dense<0.000000e+00> : vector<8x128xf32>
    %8 = tpu.matmul %6, %7, %cst_9 {dimension_numbers = #tpu.dot_dimension_numbers<[1], [0], [0], [1], [0, 0, 1, 1], [], []>} : vector<8x1024xf32>, vector<1024x128xf32>, vector<8x128xf32> -> vector<8x128xf32>
    %c0_10 = arith.constant 0 : index
    %c0_11 = arith.constant 0 : index
    %9 = vector.load %arg7[%c0_10, %c0_11] : memref<1x128xf32, #tpu.memory_space<vmem>>, vector<1x128xf32>
    %10 = vector.broadcast %9 : vector<1x128xf32> to vector<8x128xf32>
    %11 = arith.addf %8, %10 : vector<8x128xf32>
    %12 = arith.mulf %5, %11 : vector<8x128xf32>
    %c0_12 = arith.constant 0 : index
    %c0_13 = arith.constant 0 : index
    %13 = vector.load %arg5[%c0_12, %c0_13] : memref<128x128xf32, #tpu.memory_space<vmem>>, vector<128x128xf32>
    %cst_14 = arith.constant dense<0.000000e+00> : vector<8x128xf32>
    %14 = tpu.matmul %12, %13, %cst_14 {dimension_numbers = #tpu.dot_dimension_numbers<[1], [0], [0], [1], [0, 0, 1, 1], [], []>} : vector<8x128xf32>, vector<128x128xf32>, vector<8x128xf32> -> vector<8x128xf32>
    %c0_15 = arith.constant 0 : index
    %c0_16 = arith.constant 0 : index
    %15 = vector.load %arg8[%c0_15, %c0_16] : memref<1x128xf32, #tpu.memory_space<vmem>>, vector<1x128xf32>
    %16 = vector.broadcast %15 : vector<1x128xf32> to vector<8x128xf32>
    %17 = arith.addf %14, %16 : vector<8x128xf32>
    %c0_17 = arith.constant 0 : index
    %c0_18 = arith.constant 0 : index
    %18 = vector.load %arg9[%c0_17, %c0_18] : memref<8x128xf32, #tpu.memory_space<vmem>>, vector<8x128xf32>
    tpu.vector_store %arg9[%c0_17, %c0_18], %17 {strides = array<i32>} : memref<8x128xf32, #tpu.memory_space<vmem>>, vector<8x128xf32>,
    return
  }
  func.func @transform_0(%arg0: i32) -> (i32, i32) {
    %c0_i32 = arith.constant 0 : i32
    %c0_i32_0 = arith.constant 0 : i32
    return %arg0, %c0_i32 : i32, i32
  }
  func.func @transform_1(%arg0: i32) -> (i32, i32) {
    %c0_i32 = arith.constant 0 : i32
    %c0_i32_0 = arith.constant 0 : i32
    return %arg0, %c0_i32 : i32, i32
  }
  func.func @transform_2(%arg0: i32) -> (i32, i32) {
    %c0_i32 = arith.constant 0 : i32
    %c0_i32_0 = arith.constant 0 : i32
    %c0_i32_1 = arith.constant 0 : i32
    return %c0_i32, %c0_i32_0 : i32, i32
  }
  func.func @transform_3(%arg0: i32) -> (i32, i32) {
    %c0_i32 = arith.constant 0 : i32
    %c0_i32_0 = arith.constant 0 : i32
    %c0_i32_1 = arith.constant 0 : i32
    return %c0_i32, %c0_i32_0 : i32, i32
  }
  func.func @transform_4(%arg0: i32) -> (i32, i32) {
    %c0_i32 = arith.constant 0 : i32
    %c0_i32_0 = arith.constant 0 : i32
    %c0_i32_1 = arith.constant 0 : i32
    return %c0_i32, %c0_i32_0 : i32, i32
  }
  func.func @transform_5(%arg0: i32) -> (i32, i32) {
    %c0_i32 = arith.constant 0 : i32
    %c0_i32_0 = arith.constant 0 : i32
    %c0_i32_1 = arith.constant 0 : i32
    return %c0_i32, %c0_i32_0 : i32, i32
  }
  func.func @transform_6(%arg0: i32) -> (i32, i32) {
    %c0_i32 = arith.constant 0 : i32
    %c0_i32_0 = arith.constant 0 : i32
    %c0_i32_1 = arith.constant 0 : i32
    return %c0_i32, %c0_i32_0 : i32, i32
  }
  func.func @transform_7(%arg0: i32) -> (i32, i32) {
    %c0_i32 = arith.constant 0 : i32
    %c0_i32_0 = arith.constant 0 : i32
    %c0_i32_1 = arith.constant 0 : i32
    return %c0_i32, %c0_i32_0 : i32, i32
  }
  func.func @transform_8(%arg0: i32) -> (i32, i32) {
    %c0_i32 = arith.constant 0 : i32
    %c0_i32_0 = arith.constant 0 : i32
    return %arg0, %c0_i32 : i32, i32
  }
}

</mosaic_0001>

<bundles_post_ra>
// kernel: tpu_custom_call.1
= control target key start
LH: loop header
LB: loop body
LE: loop exit
PB: predicated region body
PF: predicated region fallthrough
CT: control target
= control target key end

     0   :  { %13 = vsyncpa [#allocation3], 0  ;;  %s1303_s0 = inlined_call_operand.hbm [shape: f32[2,32], index: 0, kind: input, shape index: {}]   ;;  %s1304_s1 = inlined_call_operand.hbm [shape: f32[2,1024], index: 1, kind: input, shape index: {}]   ;;  %s1305_s2 = inlined_call_operand.hbm [shape: f32[32,128], index: 2, kind: input, shape index: {}]   ;;  %s1306_s3 = inlined_call_operand.hbm [shape: f32[1024,128], index: 3, kind: input, shape index: {}]   ;;  %s1307_s4 = inlined_call_operand.hbm [shape: f32[128,128], index: 4, kind: input, shape index: {}]   ;;  %s1308_s5 = inlined_call_operand.vmem [shape: f32[1,128], index: 5, kind: input, shape index: {}]   ;;  %s1309_s6 = inlined_call_operand.vmem [shape: f32[1,128], index: 6, kind: input, shape index: {}]   ;;  %s1310_s7 = inlined_call_operand.vmem [shape: f32[1,128], index: 7, kind: input, shape index: {}]   ;;  %s1311_s8 = inlined_call_operand.hbm [shape: f32[2,128], index: 8, kind: output, shape index: {}]  }
   0x1   :  { %14 = vsyncpa [#allocation6], 0 }
   0x2   :  { %15 = vsyncpa [#allocation9], 0 }
   0x3   :  { %16 = vsyncpa [#allocation4], 0 }
   0x4   :  { %21 = vsyncadd [#allocation3], 96  ;;  %s1176_s27 = smov [#allocation2]  }
   0x5   :  { %s22_s28 = sshll.u32 %s1176_s27, 4  ;;  %s23_s28 = int_to_ptr.vmem [resolvable:$true] %s22_s28 }
   0x6   :  { %s1056_s29 = scalar_lea.vmem %s23_s28, 32  ;;  %s1060_s30 = scalar_lea.vmem %s23_s28, 128 }
   0x7   :  { %p1057_p0 = scmp.ne.s32.totalorder %s23_s28, %s1056_s29  ;;  %p1061_p1 = scmp.lt.s32.totalorder %s23_s28, %s23_s28 }
   0x8   :  { %p1062_p2 = scmp.lt.s32.totalorder %s1060_s30, %s1056_s29 }
   0xa   :  { %p1063_p3 = por %p1062_p2, %p1061_p1 }
   0xc   :  { %p1064_p4 = pnand %p1063_p3, %p1057_p0 }
   0xe   :  { %1067 = shalt.err (!%p1064_p4)
}
   0xf   :  { %s1177_s9 = smov 32   ;;  %s1178_s10 = smov 2  }
  0x10   :  { %28 = dma.hbm_to_vmem [thread:$0]  %s1303_s0, 32, %s23_s28, [#allocation3], %s1177_s9, %s1177_s9, %s1178_s10  }
  0x11   :  { %33 = vsyncadd [#allocation6], 768  ;;  %s1179_s13 = smov [#allocation5]  }
  0x12   :  { %s34_s14 = sshll.u32 %s1179_s13, 4  ;;  %s35_s14 = int_to_ptr.vmem [resolvable:$true] %s34_s14 }
  0x13   :  { %s1076_s15 = scalar_lea.vmem %s35_s14, 256  ;;  %s1080_s16 = scalar_lea.vmem %s35_s14, 1024 }
  0x14   :  { %p1077_p5 = scmp.ne.s32.totalorder %s35_s14, %s1076_s15  ;;  %p1081_p6 = scmp.lt.s32.totalorder %s35_s14, %s35_s14 }
  0x15   :  { %p1082_p7 = scmp.lt.s32.totalorder %s1080_s16, %s1076_s15 }
  0x17   :  { %p1083_p8 = por %p1082_p7, %p1081_p6 }
  0x19   :  { %p1084_p9 = pnand %p1083_p8, %p1077_p5 }
  0x1b   :  { %1087 = shalt.err (!%p1084_p9)
}
  0x1c   :  { %s1180_s17 = smov 256   ;;  %s1181_s18 = smov 16  }
  0x1d   :  { %40 = dma.hbm_to_vmem [thread:$0]  %s1304_s1, 256, %s35_s14, [#allocation6], %s1180_s17, %s1180_s17, %s1181_s18  }
  0x1e   :  { %s1182_s21 = smov [#allocation8]   ;;  %s1183_s22 = smov [#allocation7]  }
  0x1f   :  { %s58_s0 = sshll.u32 %s1182_s21, 4  ;;  %s46_s23 = sshll.u32 %s1183_s22, 4  ;;  %s59_s0 = int_to_ptr.vmem [resolvable:$true] %s58_s0  ;;  %s47_s23 = int_to_ptr.vmem [resolvable:$true] %s46_s23 }
  0x20   :  { %s1096_s24 = scalar_lea.vmem %s59_s0, 16384  ;;  %p1101_p11 = scmp.lt.s32.totalorder %s59_s0, %s59_s0 }
  0x21   :  { %p1097_p10 = scmp.ne.s32.totalorder %s59_s0, %s1096_s24  ;;  %p1102_p12 = scmp.lt.s32.totalorder %s1096_s24, %s1096_s24 }
  0x23   :  { %p1103_p13 = por %p1102_p12, %p1101_p11 }
  0x25   :  { %p1104_p0 = pnand %p1103_p13, %p1097_p10 }
  0x27   :  { %1107 = shalt.err (!%p1104_p0)
}
  0x28   :  { %s1184_s25 = smov 128   ;;  %s1185_s26 = smov 8  }
  0x29   :  { %64 = dma.hbm_to_vmem [thread:$0]  %s1306_s3, 16384, %s59_s0, [#allocation9], %s1184_s25, %s1184_s25, %s1185_s26  }
  0x2a   :  { %s1116_s1 = scalar_lea.vmem %s47_s23, 512  ;;  %p1121_p2 = scmp.lt.s32.totalorder %s47_s23, %s47_s23 }
  0x2b   :  { %p1117_p1 = scmp.ne.s32.totalorder %s47_s23, %s1116_s1  ;;  %p1122_p3 = scmp.lt.s32.totalorder %s1116_s1, %s1116_s1 }
  0x2d   :  { %p1123_p4 = por %p1122_p3, %p1121_p2 }
  0x2f   :  { %p1124_p5 = pnand %p1123_p4, %p1117_p1 }
  0x31   :  { %1127 = shalt.err (!%p1124_p5)
}
  0x32   :  { %52 = dma.hbm_to_vmem [thread:$0]  %s1305_s2, 512, %s47_s23, [#allocation6], %s1184_s25, %s1184_s25, %s1185_s26  }
  0x33   :  { %s1186_s11 = smov [#allocation10]  }
  0x34   :  { %s70_s12 = sshll.u32 %s1186_s11, 4  ;;  %s71_s12 = int_to_ptr.vmem [resolvable:$true] %s70_s12 }
  0x35   :  { %s1136_s13 = scalar_lea.vmem %s71_s12, 2048  ;;  %p1141_p7 = scmp.lt.s32.totalorder %s71_s12, %s71_s12 }
  0x36   :  { %p1137_p6 = scmp.ne.s32.totalorder %s71_s12, %s1136_s13  ;;  %p1142_p8 = scmp.lt.s32.totalorder %s1136_s13, %s1136_s13 }
  0x38   :  { %p1143_p9 = por %p1142_p8, %p1141_p7 }
  0x3a   :  { %p1144_p10 = pnand %p1143_p9, %p1137_p6 }
  0x3c   :  { %1147 = shalt.err (!%p1144_p10)
}
  0x3d   :  { %76 = dma.hbm_to_vmem [thread:$0]  %s1307_s4, 2048, %s71_s12, [#allocation9], %s1184_s25, %s1184_s25, %s1185_s26  }
  0x3e   :  { %1168 = dma.done.wait [#allocation3], 128  }
  0x3f   :  { %1169 = vsyncadd [#allocation3], 4294967168 }
  0x40   :  { %1170 = dma.done.wait [#allocation6], 1536  }
  0x41   :  { %1171 = vsyncadd [#allocation6], 4294965760 }
  0x42   :  { %1172 = dma.done.wait [#allocation9], 18432  }
  0x43   :  { %1173 = vsyncadd [#allocation9], 4294948864  ;;  %v1187_v0 = vmov 0.0   ;;  %vm1188_vm0 = vmmov 0   ;;  %v102_v1 = vld [vmem:[#allocation7 + $0x18] sm:$0xff]  ;;  %v101_v4 = vld [vmem:[#allocation7 + $0x10] sm:$0xff]  ;;  %v342_v32 = vlaneseq }
  0x44   :  { %975 = vmatprep.subr.mxu0 %v1187_v0  ;;  %983 = vmatprep.mubr.msk.f32.mxu0 %vm1188_vm0, %v1187_v0  ;;  %v223_v2 = vld [vmem:[#allocation8 + $0xf8] sm:$0xff]  ;;  %v222_v5 = vld [vmem:[#allocation8 + $0xf0] sm:$0xff]  ;;  %v100_v7 = vld [vmem:[#allocation7 + $0x8] sm:$0xff]  ;;  %vm110_vm1 = vcmask 261120   ;;  %v1189_v30 = vmov 1983009808  }
  0x45   :  { %v207_v3 = vld [vmem:[#allocation8 + $0x78] sm:$0xff]  ;;  %976 = vmatpush3.msra.mxu0 %v102_v1  ;;  %818 = vmatprep.subr.mxu1 %v223_v2  ;;  %v206_v6 = vld [vmem:[#allocation8 + $0x70] sm:$0xff]  ;;  %v221_v8 = vld [vmem:[#allocation8 + $0xe8] sm:$0xff]  ;;  %v340_v31 = vunpack.c.l.s4 %v1189_v30  ;;  %v343_v43 = vshrl.u32 %v342_v32, 7 }
  0x46   :  { %977 = vmatprep.subr.mxu0 %v1187_v0  ;;  %819 = vmatpush3.msra.mxu1 %v207_v3  ;;  %v205_v9 = vld [vmem:[#allocation8 + $0x68] sm:$0xff]  ;;  %v99_v10 = vld [vmem:[#allocation7] sm:$0xff]  ;;  %v98_v12 = vld [vmem:[#allocation2] sm:$0xff] }
  0x47   :  { %978 = vmatpush3.msra.mxu0 %v101_v4  ;;  %820 = vmatprep.subr.mxu1 %v222_v5  ;;  %v220_v11 = vld [vmem:[#allocation8 + $0xe0] sm:$0xff]  ;;  %v255_v14 = vld [vmem:[#allocation8 + $0x1f8] sm:$0xff]  ;;  %v254_v18 = vld [vmem:[#allocation8 + $0x1f0] sm:$0xff]  ;;  %v341_v42 = vunpack.c.0.s8 %v340_v31 }
  0x48   :  { %979 = vmatprep.subr.mxu0 %v1187_v0  ;;  %821 = vmatpush3.msra.mxu1 %v206_v6  ;;  %v204_v13 = vld [vmem:[#allocation8 + $0x60] sm:$0xff]  ;;  %v219_v15 = vld [vmem:[#allocation8 + $0xd8] sm:$0xff]  ;;  %v218_v19 = vld [vmem:[#allocation8 + $0xd0] sm:$0xff] }
  0x49   :  { %980 = vmatpush3.msra.mxu0 %v100_v7  ;;  %822 = vmatprep.subr.mxu1 %v221_v8  ;;  %v239_v16 = vld [vmem:[#allocation8 + $0x178] sm:$0xff]  ;;  %v238_v20 = vld [vmem:[#allocation8 + $0x170] sm:$0xff]  ;;  %v253_v22 = vld [vmem:[#allocation8 + $0x1e8] sm:$0xff]  ;;  %v1260_v52 = vsub.s32 %v341_v42, %v343_v43 }
  0x4a   :  { %981 = vmatprep.subr.mxu0 %v1187_v0  ;;  %823 = vmatpush3.msra.mxu1 %v205_v9  ;;  %v203_v17 = vld [vmem:[#allocation8 + $0x58] sm:$0xff]  ;;  %v202_v21 = vld [vmem:[#allocation8 + $0x50] sm:$0xff]  ;;  %v217_v23 = vld [vmem:[#allocation8 + $0xc8] sm:$0xff] }
  0x4b   :  { %982 = vmatpush3.msra.mxu0 %v99_v10  ;;  %824 = vmatprep.subr.mxu1 %v220_v11  ;;  %v237_v24 = vld [vmem:[#allocation8 + $0x168] sm:$0xff]  ;;  %v252_v26 = vld [vmem:[#allocation8 + $0x1e0] sm:$0xff]  ;;  %v251_v33 = vld [vmem:[#allocation8 + $0x1d8] sm:$0xff] }
  0x4c   :  { %984 = vmatmul.mubr.msk.f32.vlgmr.msra.gmra.mxu0 %vm110_vm1, %v98_v12  ;;  %825 = vmatpush3.msra.mxu1 %v204_v13  ;;  %v201_v25 = vld [vmem:[#allocation8 + $0x48] sm:$0xff]  ;;  %v216_v27 = vld [vmem:[#allocation8 + $0xc0] sm:$0xff]  ;;  %v215_v34 = vld [vmem:[#allocation8 + $0xb8] sm:$0xff] }
  0x4d   :  { %853 = vmatprep.subr.mxu0 %v255_v14  ;;  %826 = vmatprep.subr.mxu1 %v219_v15  ;;  %v236_v28 = vld [vmem:[#allocation8 + $0x160] sm:$0xff]  ;;  %v235_v35 = vld [vmem:[#allocation8 + $0x158] sm:$0xff]  ;;  %v250_v37 = vld [vmem:[#allocation8 + $0x1d0] sm:$0xff] }
  0x4e   :  { %854 = vmatpush3.msra.mxu0 %v239_v16  ;;  %827 = vmatpush3.msra.mxu1 %v203_v17  ;;  %v200_v29 = vld [vmem:[#allocation8 + $0x40] sm:$0xff]  ;;  %v199_v36 = vld [vmem:[#allocation8 + $0x38] sm:$0xff]  ;;  %v214_v38 = vld [vmem:[#allocation8 + $0xb0] sm:$0xff] }
  0x4f   :  { %855 = vmatprep.subr.mxu0 %v254_v18  ;;  %828 = vmatprep.subr.mxu1 %v218_v19  ;;  %v234_v39 = vld [vmem:[#allocation8 + $0x150] sm:$0xff]  ;;  %v249_v41 = vld [vmem:[#allocation8 + $0x1c8] sm:$0xff]  ;;  %v248_v47 = vld [vmem:[#allocation8 + $0x1c0] sm:$0xff] }
  0x50   :  { %856 = vmatpush3.msra.mxu0 %v238_v20  ;;  %829 = vmatpush3.msra.mxu1 %v202_v21  ;;  %v198_v40 = vld [vmem:[#allocation8 + $0x30] sm:$0xff]  ;;  %v213_v44 = vld [vmem:[#allocation8 + $0xa8] sm:$0xff]  ;;  %v212_v48 = vld [vmem:[#allocation8 + $0xa0] sm:$0xff] }
  0x51   :  { %857 = vmatprep.subr.mxu0 %v253_v22  ;;  %830 = vmatprep.subr.mxu1 %v217_v23  ;;  %v233_v45 = vld [vmem:[#allocation8 + $0x148] sm:$0xff]  ;;  %v232_v49 = vld [vmem:[#allocation8 + $0x140] sm:$0xff]  ;;  %v247_v51 = vld [vmem:[#allocation8 + $0x1b8] sm:$0xff] }
  0x52   :  { %858 = vmatpush3.msra.mxu0 %v237_v24  ;;  %831 = vmatpush3.msra.mxu1 %v201_v25  ;;  %v197_v46 = vld [vmem:[#allocation8 + $0x28] sm:$0xff]  ;;  %v196_v50 = vld [vmem:[#allocation8 + $0x20] sm:$0xff]  ;;  %v211_v53 = vld [vmem:[#allocation8 + $0x98] sm:$0xff] }
  0x53   :  { %859 = vmatprep.subr.mxu0 %v252_v26  ;;  %832 = vmatprep.subr.mxu1 %v216_v27  ;;  %v1036_v54 = vld [vmem:[#allocation5] ss:$16 sps:$4 sm:$0xff]   ;;  %v231_v56 = vld [vmem:[#allocation8 + $0x138] sm:$0xff]  ;;  %v245_v1 = vld [vmem:[#allocation8 + $0x1a8] sm:$0xff] }
  0x54   :  { %860 = vmatpush3.msra.mxu0 %v236_v28  ;;  %833 = vmatpush3.msra.mxu1 %v200_v29  ;;  %v1039_v55 = vld [vmem:[#allocation5 + $0x20] ss:$16 sps:$4 sm:$0xff]   ;;  %v195_v57 = vld [vmem:[#allocation8 + $0x18] sm:$0xff]  ;;  %v345_v62 = vrot.slane %v1036_v54, %v1260_v52  ;;  %v209_v2 = vld [vmem:[#allocation8 + $0x88] sm:$0xff] }
  0x55   :  { %861 = vmatprep.subr.mxu0 %v251_v33  ;;  %834 = vmatprep.subr.mxu1 %v215_v34  ;;  %v246_v58 = vld [vmem:[#allocation8 + $0x1b0] sm:$0xff]  ;;  %v359_v63 = vrot.slane %v1039_v55, %v1260_v52  ;;  %v229_v3 = vld [vmem:[#allocation8 + $0x128] sm:$0xff]  ;;  %v244_v5 = vld [vmem:[#allocation8 + $0x1a0] sm:$0xff] }
  0x56   :  { %862 = vmatpush3.msra.mxu0 %v235_v35  ;;  %835 = vmatpush3.msra.mxu1 %v199_v36  ;;  %v210_v59 = vld [vmem:[#allocation8 + $0x90] sm:$0xff]  ;;  %v193_v4 = vld [vmem:[#allocation8 + $0x8] sm:$0xff]  ;;  %v208_v6 = vld [vmem:[#allocation8 + $0x80] sm:$0xff] }
  0x57   :  { %863 = vmatprep.subr.mxu0 %v250_v37  ;;  %836 = vmatprep.subr.mxu1 %v214_v38  ;;  %v230_v60 = vld [vmem:[#allocation8 + $0x130] sm:$0xff]  ;;  %v228_v7 = vld [vmem:[#allocation8 + $0x120] sm:$0xff]  ;;  %v368_v11 = vcombine.high %v345_v62, %v359_v63  ;;  %v243_v12 = vld [vmem:[#allocation8 + $0x198] sm:$0xff]  ;;  %v367_v15 = vcombine.low %v345_v62, %v359_v63 }
  0x58   :  { %864 = vmatpush3.msra.mxu0 %v234_v39  ;;  %837 = vmatpush3.msra.mxu1 %v198_v40  ;;  %v194_v61 = vld [vmem:[#allocation8 + $0x10] sm:$0xff]  ;;  %v192_v8 = vld [vmem:[#allocation8] sm:$0xff]  ;;  %v227_v13 = vld [vmem:[#allocation8 + $0x118] sm:$0xff] }
  0x59   :  { %865 = vmatprep.subr.mxu0 %v249_v41  ;;  %838 = vmatprep.subr.mxu1 %v213_v44  ;;  %v1038_v9 = vld [vmem:[#allocation5 + $0x4] ss:$16 sps:$4 sm:$0xff]   ;;  %v287_v14 = vld [vmem:[#allocation8 + $0x2f8] sm:$0xff]  ;;  %v241_v22 = vld [vmem:[#allocation8 + $0x188] sm:$0xff] }
  0x5a   :  { %866 = vmatpush3.msra.mxu0 %v233_v45  ;;  %839 = vmatpush3.msra.mxu1 %v197_v46  ;;  %v1041_v10 = vld [vmem:[#allocation5 + $0x24] ss:$16 sps:$4 sm:$0xff]   ;;  %v271_v17 = vld [vmem:[#allocation8 + $0x278] sm:$0xff]  ;;  %v352_v19 = vrot.slane %v1038_v9, %v1260_v52  ;;  %v225_v24 = vld [vmem:[#allocation8 + $0x108] sm:$0xff] }
  0x5b   :  { %867 = vmatprep.subr.mxu0 %v248_v47  ;;  %840 = vmatprep.subr.mxu1 %v212_v48  ;;  %v242_v16 = vld [vmem:[#allocation8 + $0x190] sm:$0xff]  ;;  %v366_v20 = vrot.slane %v1041_v10, %v1260_v52  ;;  %v285_v25 = vld [vmem:[#allocation8 + $0x2e8] sm:$0xff]  ;;  %v240_v26 = vld [vmem:[#allocation8 + $0x180] sm:$0xff] }
  0x5c   :  { %868 = vmatpush3.msra.mxu0 %v232_v49  ;;  %841 = vmatpush3.msra.mxu1 %v196_v50  ;;  %v226_v18 = vld [vmem:[#allocation8 + $0x110] sm:$0xff]  ;;  %v269_v27 = vld [vmem:[#allocation8 + $0x268] sm:$0xff]  ;;  %v224_v28 = vld [vmem:[#allocation8 + $0x100] sm:$0xff] }
  0x5d   :  { %869 = vmatprep.subr.mxu0 %v247_v51  ;;  %842 = vmatprep.subr.mxu1 %v211_v53  ;;  %v286_v21 = vld [vmem:[#allocation8 + $0x2f0] sm:$0xff]  ;;  %v370_v29 = vcombine.high %v352_v19, %v366_v20  ;;  %v284_v30 = vld [vmem:[#allocation8 + $0x2e0] sm:$0xff]  ;;  %v369_v31 = vcombine.low %v352_v19, %v366_v20  ;;  %v319_v33 = vld [vmem:[#allocation8 + $0x3f8] sm:$0xff] }
  0x5e   :  { %870 = vmatpush3.msra.mxu0 %v231_v56  ;;  %843 = vmatpush3.msra.mxu1 %v195_v57  ;;  %v270_v23 = vld [vmem:[#allocation8 + $0x270] sm:$0xff]  ;;  %v268_v32 = vld [vmem:[#allocation8 + $0x260] sm:$0xff]  ;;  %v283_v34 = vld [vmem:[#allocation8 + $0x2d8] sm:$0xff] }
  0x5f   :  { %871 = vmatprep.subr.mxu0 %v246_v58  ;;  %844 = vmatprep.subr.mxu1 %v210_v59  ;;  %v303_v35 = vld [vmem:[#allocation8 + $0x378] sm:$0xff]  ;;  %v318_v37 = vld [vmem:[#allocation8 + $0x3f0] sm:$0xff]  ;;  %v317_v41 = vld [vmem:[#allocation8 + $0x3e8] sm:$0xff] }
  0x60   :  { %872 = vmatpush3.msra.mxu0 %v230_v60  ;;  %845 = vmatpush3.msra.mxu1 %v194_v61  ;;  %v267_v36 = vld [vmem:[#allocation8 + $0x258] sm:$0xff]  ;;  %v282_v38 = vld [vmem:[#allocation8 + $0x2d0] sm:$0xff]  ;;  %v281_v42 = vld [vmem:[#allocation8 + $0x2c8] sm:$0xff] }
  0x61   :  { %873 = vmatprep.subr.mxu0 %v245_v1  ;;  %846 = vmatprep.subr.mxu1 %v209_v2  ;;  %v302_v39 = vld [vmem:[#allocation8 + $0x370] sm:$0xff]  ;;  %v301_v43 = vld [vmem:[#allocation8 + $0x368] sm:$0xff]  ;;  %v316_v45 = vld [vmem:[#allocation8 + $0x3e0] sm:$0xff] }
  0x62   :  { %874 = vmatpush3.msra.mxu0 %v229_v3  ;;  %847 = vmatpush3.msra.mxu1 %v193_v4  ;;  %v266_v40 = vld [vmem:[#allocation8 + $0x250] sm:$0xff]  ;;  %v265_v44 = vld [vmem:[#allocation8 + $0x248] sm:$0xff]  ;;  %v280_v46 = vld [vmem:[#allocation8 + $0x2c0] sm:$0xff] }
  0x63   :  { %875 = vmatprep.subr.mxu0 %v244_v5  ;;  %848 = vmatprep.subr.mxu1 %v208_v6  ;;  %v300_v47 = vld [vmem:[#allocation8 + $0x360] sm:$0xff]  ;;  %v315_v49 = vld [vmem:[#allocation8 + $0x3d8] sm:$0xff]  ;;  %v314_v54 = vld [vmem:[#allocation8 + $0x3d0] sm:$0xff] }
  0x64   :  { %876 = vmatpush3.msra.mxu0 %v228_v7  ;;  %849 = vmatpush3.msra.mxu1 %v192_v8  ;;  %v264_v48 = vld [vmem:[#allocation8 + $0x240] sm:$0xff]  ;;  %v279_v50 = vld [vmem:[#allocation8 + $0x2b8] sm:$0xff]  ;;  %v278_v55 = vld [vmem:[#allocation8 + $0x2b0] sm:$0xff] }
  0x65   :  { %877 = vmatprep.subr.mxu0 %v243_v12  ;;  %479 = vmatprep.mubr.f32.mxu1 %v368_v11  ;;  %v299_v51 = vld [vmem:[#allocation8 + $0x358] sm:$0xff]  ;;  %v298_v56 = vld [vmem:[#allocation8 + $0x350] sm:$0xff]  ;;  %v313_v58 = vld [vmem:[#allocation8 + $0x3c8] sm:$0xff] }
  0x66   :  { %878 = vmatpush3.msra.mxu0 %v227_v13  ;;  %888 = vmatprep.subr.mxu1 %v287_v14  ;;  %v263_v53 = vld [vmem:[#allocation8 + $0x238] sm:$0xff]  ;;  %v262_v57 = vld [vmem:[#allocation8 + $0x230] sm:$0xff]  ;;  %v277_v59 = vld [vmem:[#allocation8 + $0x2a8] sm:$0xff] }
  0x67   :  { %480 = vmatmul.mubr.f32.vlgmr.msra.gmra.mxu1 %v367_v15  ;;  %879 = vmatprep.subr.mxu0 %v242_v16  ;;  %v297_v60 = vld [vmem:[#allocation8 + $0x348] sm:$0xff]  ;;  %v312_v62 = vld [vmem:[#allocation8 + $0x3c0] sm:$0xff]  ;;  %v311_v5 = vld [vmem:[#allocation8 + $0x3b8] sm:$0xff] }
  0x68   :  { %889 = vmatpush3.msra.mxu1 %v271_v17  ;;  %880 = vmatpush3.msra.mxu0 %v226_v18  ;;  %v261_v61 = vld [vmem:[#allocation8 + $0x228] sm:$0xff]  ;;  %v276_v63 = vld [vmem:[#allocation8 + $0x2a0] sm:$0xff]  ;;  %v275_v6 = vld [vmem:[#allocation8 + $0x298] sm:$0xff] }
  0x69   :  { %890 = vmatprep.subr.mxu1 %v286_v21  ;;  %881 = vmatprep.subr.mxu0 %v241_v22  ;;  %v296_v1 = vld [vmem:[#allocation8 + $0x340] sm:$0xff]  ;;  %v1042_v3 = vld [vmem:[#allocation5 + $0x8] ss:$16 sps:$4 sm:$0xff]   ;;  %v1046_v9 = vld [vmem:[#allocation5 + $0xc] ss:$16 sps:$4 sm:$0xff]  }
  0x6a   :  { %891 = vmatpush3.msra.mxu1 %v270_v23  ;;  %882 = vmatpush3.msra.mxu0 %v225_v24  ;;  %v260_v2 = vld [vmem:[#allocation8 + $0x220] sm:$0xff]  ;;  %v1044_v4 = vld [vmem:[#allocation5 + $0x28] ss:$16 sps:$4 sm:$0xff]   ;;  %v1047_v10 = vld [vmem:[#allocation5 + $0x2c] ss:$16 sps:$4 sm:$0xff]   ;;  %v381_v15 = vrot.slane %v1042_v3, %v1260_v52  ;;  %v388_v21 = vrot.slane %v1046_v9, %v1260_v52 }
  0x6b   :  { %892 = vmatprep.subr.mxu1 %v285_v25  ;;  %883 = vmatprep.subr.mxu0 %v240_v26  ;;  %v295_v7 = vld [vmem:[#allocation8 + $0x338] sm:$0xff]  ;;  %v310_v11 = vld [vmem:[#allocation8 + $0x3b0] sm:$0xff]  ;;  %v395_v16 = vrot.slane %v1044_v4, %v1260_v52  ;;  %v309_v17 = vld [vmem:[#allocation8 + $0x3a8] sm:$0xff]  ;;  %v402_v22 = vrot.slane %v1047_v10, %v1260_v52 }
  0x6c   :  { %893 = vmatpush3.msra.mxu1 %v269_v27  ;;  %884 = vmatpush3.msra.mxu0 %v224_v28  ;;  %v259_v8 = vld [vmem:[#allocation8 + $0x218] sm:$0xff]  ;;  %v274_v12 = vld [vmem:[#allocation8 + $0x290] sm:$0xff]  ;;  %v273_v18 = vld [vmem:[#allocation8 + $0x288] sm:$0xff] }
  0x6d   :  { %549 = vmatprep.mubr.f32.mxu0 %v370_v29  ;;  %894 = vmatprep.subr.mxu1 %v284_v30  ;;  %v294_v13 = vld [vmem:[#allocation8 + $0x330] sm:$0xff]  ;;  %v293_v19 = vld [vmem:[#allocation8 + $0x328] sm:$0xff]  ;;  %v308_v23 = vld [vmem:[#allocation8 + $0x3a0] sm:$0xff]  ;;  %v404_v27 = vcombine.high %v381_v15, %v395_v16  ;;  %v403_v29 = vcombine.low %v381_v15, %v395_v16 }
  0x6e   :  { %550 = vmatmul.mubr.f32.vlgmr.msra.gmra.mxu0 %v369_v31  ;;  %895 = vmatpush3.msra.mxu1 %v268_v32  ;;  %v258_v14 = vld [vmem:[#allocation8 + $0x210] sm:$0xff]  ;;  %v257_v20 = vld [vmem:[#allocation8 + $0x208] sm:$0xff]  ;;  %v272_v24 = vld [vmem:[#allocation8 + $0x280] sm:$0xff]  ;;  %v406_v31 = vcombine.high %v388_v21, %v402_v22 }
  0x6f   :  { %923 = vmatprep.subr.mxu0 %v319_v33  ;;  %896 = vmatprep.subr.mxu1 %v283_v34  ;;  %v292_v25 = vld [vmem:[#allocation8 + $0x320] sm:$0xff]  ;;  %v307_v28 = vld [vmem:[#allocation8 + $0x398] sm:$0xff]  ;;  %v306_v52 = vld [vmem:[#allocation8 + $0x390] sm:$0xff] }
  0x70   :  { %924 = vmatpush3.msra.mxu0 %v303_v35  ;;  %897 = vmatpush3.msra.mxu1 %v267_v36  ;;  %v256_v26 = vld [vmem:[#allocation8 + $0x200] sm:$0xff]  ;;  %v291_v30 = vld [vmem:[#allocation8 + $0x318] sm:$0xff]  ;;  %v290_v32 = vld [vmem:[#allocation8 + $0x310] sm:$0xff] }
  0x71   :  { %925 = vmatprep.subr.mxu0 %v318_v37  ;;  %898 = vmatprep.subr.mxu1 %v282_v38  ;;  %v305_v33 = vld [vmem:[#allocation8 + $0x388] sm:$0xff]  ;;  %v304_v35 = vld [vmem:[#allocation8 + $0x380] sm:$0xff]  ;;  %v405_v37 = vcombine.low %v388_v21, %v402_v22  ;;  %v711_v38 = vld [vmem:[#allocation10 + $0x78] sm:$0xff] }
  0x72   :  { %926 = vmatpush3.msra.mxu0 %v302_v39  ;;  %899 = vmatpush3.msra.mxu1 %v266_v40  ;;  %v289_v34 = vld [vmem:[#allocation8 + $0x308] sm:$0xff]  ;;  %v288_v36 = vld [vmem:[#allocation8 + $0x300] sm:$0xff]  ;;  %v710_v39 = vld [vmem:[#allocation10 + $0x70] sm:$0xff] }
  0x73   :  { %927 = vmatprep.subr.mxu0 %v317_v41  ;;  %900 = vmatprep.subr.mxu1 %v281_v42  ;;  %v709_v40 = vld [vmem:[#allocation10 + $0x68] sm:$0xff]  ;;  %v708_v41 = vld [vmem:[#allocation10 + $0x60] sm:$0xff]  ;;  %v707_v42 = vld [vmem:[#allocation10 + $0x58] sm:$0xff] }
  0x74   :  { %928 = vmatpush3.msra.mxu0 %v301_v43  ;;  %901 = vmatpush3.msra.mxu1 %v265_v44  ;;  %v706_v43 = vld [vmem:[#allocation10 + $0x50] sm:$0xff]  ;;  %v705_v44 = vld [vmem:[#allocation10 + $0x48] sm:$0xff] }
  0x75   :  { %929 = vmatprep.subr.mxu0 %v316_v45  ;;  %902 = vmatprep.subr.mxu1 %v280_v46  ;;  %v704_v45 = vld [vmem:[#allocation10 + $0x40] sm:$0xff]  ;;  %v703_v46 = vld [vmem:[#allocation10 + $0x38] sm:$0xff] }
  0x76   :  { %930 = vmatpush3.msra.mxu0 %v300_v47  ;;  %903 = vmatpush3.msra.mxu1 %v264_v48  ;;  %v702_v47 = vld [vmem:[#allocation10 + $0x30] sm:$0xff]  ;;  %v701_v48 = vld [vmem:[#allocation10 + $0x28] sm:$0xff] }
  0x77   :  { %931 = vmatprep.subr.mxu0 %v315_v49  ;;  %904 = vmatprep.subr.mxu1 %v279_v50  ;;  %v700_v49 = vld [vmem:[#allocation10 + $0x20] sm:$0xff]  ;;  %v699_v50 = vld [vmem:[#allocation10 + $0x18] sm:$0xff] }
  0x78   :  { %932 = vmatpush3.msra.mxu0 %v299_v51  ;;  %905 = vmatpush3.msra.mxu1 %v263_v53  ;;  %v698_v51 = vld [vmem:[#allocation10 + $0x10] sm:$0xff]  ;;  %v697_v53 = vld [vmem:[#allocation10 + $0x8] sm:$0xff] }
  0x79   :  { %933 = vmatprep.subr.mxu0 %v314_v54  ;;  %906 = vmatprep.subr.mxu1 %v278_v55  ;;  %v696_v54 = vld [vmem:[#allocation10] sm:$0xff] }
  0x7a   :  { %934 = vmatpush3.msra.mxu0 %v298_v56  ;;  %907 = vmatpush3.msra.mxu1 %v262_v57 }
  0x7b   :  { %935 = vmatprep.subr.mxu0 %v313_v58  ;;  %908 = vmatprep.subr.mxu1 %v277_v59 }
  0x7c   :  { %936 = vmatpush3.msra.mxu0 %v297_v60  ;;  %909 = vmatpush3.msra.mxu1 %v261_v61 }
  0x7d   :  { %937 = vmatprep.subr.mxu0 %v312_v62  ;;  %910 = vmatprep.subr.mxu1 %v276_v63  ;;  %v811_v62 = vld [vmem:[%s1309_s6] ss:$0 sm:$0xff] }
  0x7e   :  { %938 = vmatpush3.msra.mxu0 %v296_v1  ;;  %911 = vmatpush3.msra.mxu1 %v260_v2 }
  0x7f   :  { %939 = vmatprep.subr.mxu0 %v311_v5  ;;  %912 = vmatprep.subr.mxu1 %v275_v6  ;;  %v809_v6 = vld [vmem:[%s1308_s5] ss:$0 sm:$0xff] }
  0x80   :  { %940 = vmatpush3.msra.mxu0 %v295_v7  ;;  %913 = vmatpush3.msra.mxu1 %v259_v8 }
  0x81   :  { %941 = vmatprep.subr.mxu0 %v310_v11  ;;  %914 = vmatprep.subr.mxu1 %v274_v12 }
  0x82   :  { %942 = vmatpush3.msra.mxu0 %v294_v13  ;;  %915 = vmatpush3.msra.mxu1 %v258_v14  ;;  %v812_v13 = vld [vmem:[%s1310_s7] ss:$0 sm:$0xff] }
  0x83   :  { %943 = vmatprep.subr.mxu0 %v309_v17  ;;  %916 = vmatprep.subr.mxu1 %v273_v18 }
  0x84   :  { %944 = vmatpush3.msra.mxu0 %v293_v19  ;;  %917 = vmatpush3.msra.mxu1 %v257_v20 }
  0x85   :  { %945 = vmatprep.subr.mxu0 %v308_v23  ;;  %918 = vmatprep.subr.mxu1 %v272_v24 }
  0x86   :  { %946 = vmatpush3.msra.mxu0 %v292_v25  ;;  %919 = vmatpush3.msra.mxu1 %v256_v26 }
  0x87   :  { %619 = vmatprep.mubr.f32.mxu1 %v404_v27  ;;  %947 = vmatprep.subr.mxu0 %v307_v28 }
  0x88   :  { %620 = vmatmul.mubr.f32.vlgmr.msra.gmra.mxu1 %v403_v29  ;;  %948 = vmatpush3.msra.mxu0 %v291_v30 }
  0x89   :  { %949 = vmatprep.subr.mxu0 %v306_v52  ;;  %689 = vmatprep.mubr.f32.mxu0 %v406_v31 }
  0x8a   :  { %950 = vmatpush3.msra.mxu0 %v290_v32  ;;  %986 = vmatprep.subr.mxu1 %v1187_v0 }
  0x8b   :  { %951 = vmatprep.subr.mxu0 %v305_v33  ;;  %1018 = vmatprep.mubr.msk.f32.mxu1 %vm1188_vm0, %v1187_v0 }
  0x8c   :  { %952 = vmatpush3.msra.mxu0 %v289_v34  ;;  %987 = vmatpush3.msra.mxu1 %v711_v38 }
  0x8d   :  { %953 = vmatprep.subr.mxu0 %v304_v35  ;;  %988 = vmatprep.subr.mxu1 %v1187_v0 }
  0x8e   :  { %954 = vmatpush3.msra.mxu0 %v288_v36  ;;  %989 = vmatpush3.msra.mxu1 %v710_v39 }
  0x8f   :  { %690 = vmatmul.mubr.f32.vlgmr.msra.gmra.mxu0 %v405_v37  ;;  %990 = vmatprep.subr.mxu1 %v1187_v0 }
  0x90   :  { %991 = vmatpush3.msra.mxu1 %v709_v40 }
  0x91   :  { %992 = vmatprep.subr.mxu1 %v1187_v0 }
  0x92   :  { %993 = vmatpush3.msra.mxu1 %v708_v41 }
  0x93   :  { %994 = vmatprep.subr.mxu1 %v1187_v0 }
  0x94   :  { %995 = vmatpush3.msra.mxu1 %v707_v42 }
  0x95   :  { %996 = vmatprep.subr.mxu1 %v1187_v0 }
  0x96   :  { %997 = vmatpush3.msra.mxu1 %v706_v43 }
  0x97   :  { %998 = vmatprep.subr.mxu1 %v1187_v0 }
  0x98   :  { %999 = vmatpush3.msra.mxu1 %v705_v44 }
  0x99   :  { %1000 = vmatprep.subr.mxu1 %v1187_v0 }
  0x9a   :  { %1001 = vmatpush3.msra.mxu1 %v704_v45 }
  0x9b   :  { %1002 = vmatprep.subr.mxu1 %v1187_v0 }
  0x9c   :  { %1003 = vmatpush3.msra.mxu1 %v703_v46 }
  0x9d   :  { %1004 = vmatprep.subr.mxu1 %v1187_v0 }
  0x9e   :  { %1005 = vmatpush3.msra.mxu1 %v702_v47 }
  0x9f   :  { %1006 = vmatprep.subr.mxu1 %v1187_v0 }
  0xa0   :  { %1007 = vmatpush3.msra.mxu1 %v701_v48 }
  0xa1   :  { %1008 = vmatprep.subr.mxu1 %v1187_v0 }
  0xa2   :  { %1009 = vmatpush3.msra.mxu1 %v700_v49 }
  0xa3   :  { %1010 = vmatprep.subr.mxu1 %v1187_v0 }
  0xa4   :  { %1011 = vmatpush3.msra.mxu1 %v699_v50 }
  0xa5   :  { %1012 = vmatprep.subr.mxu1 %v1187_v0 }
  0xa6   :  { %1013 = vmatpush3.msra.mxu1 %v698_v51 }
  0xa7   :  { %1014 = vmatprep.subr.mxu1 %v1187_v0 }
  0xa8   :  { %1015 = vmatpush3.msra.mxu1 %v697_v53 }
  0xa9   :  { %1016 = vmatprep.subr.mxu1 %v1187_v0 }
  0xaa   :  { %1017 = vmatpush3.msra.mxu1 %v696_v54 }
 0x10c   :  { %v180_v55 = vpop.f32.mrf.mxu0 }
 0x10d   :  { %v181_v10 = vadd.f32 %v809_v6, %v180_v55 }
 0x10e   :  { %v985_v56 = vpop.f32.mrf.mxu0 }
 0x127   :  { %v850_v57 = vpop.f32.mrf.mxu1 }
 0x129   :  { %v851_v58 = vpop.f32.mrf.mxu1 }
 0x12a   :  { %v852_v60 = vadd.f32 %v851_v58, %v850_v57 }
 0x12c   :  { %v482_v2 = vadd.f32 %v852_v60, %v811_v62 }
 0x12e   :  { %v885_v59 = vpop.f32.mrf.mxu0 }
 0x130   :  { %v886_v63 = vpop.f32.mrf.mxu0 }
 0x131   :  { %v887_v3 = vadd.f32 %v886_v63, %v885_v59 }
 0x133   :  { %v552_v0 = vadd.f32 %v887_v3, %v482_v2 }
 0x148   :  { %v920_v61 = vpop.f32.mrf.mxu1 }
 0x14a   :  { %v921_v1 = vpop.f32.mrf.mxu1 }
 0x14b   :  { %v922_v4 = vadd.f32 %v921_v1, %v920_v61 }
 0x14d   :  { %v622_v8 = vadd.f32 %v922_v4, %v552_v0 }
 0x14f   :  { %v955_v5 = vpop.f32.mrf.mxu0 }
 0x151   :  { %v956_v7 = vpop.f32.mrf.mxu0 }
 0x152   :  { %v957_v9 = vadd.f32 %v956_v7, %v955_v5 }
 0x154   :  { %v692_v11 = vadd.f32 %v957_v9, %v622_v8 }
 0x156   :  { %v695_v12 = vmul.f32 %v692_v11, %v181_v10 }
 0x158   :  { %1019 = vmatmul.mubr.f32.vlgmr.msra.gmra.mxu1 %v695_v12 }
 0x218   :  { %v785_v14 = vpop.f32.mrf.mxu1 }
 0x219   :  { %v786_v15 = vadd.f32 %v812_v13, %v785_v14 }
 0x21a   :  { %v1020_v16 = vpop.f32.mrf.mxu1 }
 0x21b   :  { %789 = vst [vmem:[#allocation11] sm:$0xff] %v786_v15 }
 0x21c   :  { %794 = vsyncadd [#allocation4], 96  ;;  %s1190_s18 = smov [#allocation11]  }
 0x21d   :  { %s795_s19 = sshll.u32 %s1190_s18, 4  ;;  %s796_s19 = int_to_ptr.vmem [resolvable:$true] %s795_s19 }
 0x21e   :  { %s1148_s5 = scalar_lea.vmem %s796_s19, 32  ;;  %s1152_s20 = scalar_lea.vmem %s796_s19, 128 }
 0x21f   :  { %p1149_p11 = scmp.ne.s32.totalorder %s796_s19, %s1148_s5  ;;  %p1153_p12 = scmp.lt.s32.totalorder %s796_s19, %s796_s19 }
 0x220   :  { %p1154_p13 = scmp.lt.s32.totalorder %s1152_s20, %s1148_s5 }
 0x222   :  { %p1155_p0 = por %p1154_p13, %p1153_p12 }
 0x224   :  { %p1156_p1 = pnand %p1155_p0, %p1149_p11 }
 0x226   :  { %1159 = shalt.err (!%p1156_p1)
}
 0x227   :  { %801 = dma.vmem_to_hbm [thread:$0]  %s796_s19, 32, %s1311_s8, [#allocation4], %s1177_s9, %s1177_s9, %s1178_s10  }
 0x228   :  { %1174 = dma.done.wait [#allocation4], 128  }
 0x229   :  { %1175 = vsyncadd [#allocation4], 4294967168 }
 0x22a   :  { %805 = vsyncpa [#allocation3], 1 }
 0x22b   :  { %806 = vsyncpa [#allocation6], 1 }
 0x22c   :  { %807 = vsyncpa [#allocation9], 1 }
 0x22d   :  { %808 = vsyncpa [#allocation4], 1 }

</bundles_post_ra>
